<compile_context>
chip_gen: v7x
topology: tpu7x:2x2x1
jax: 0.10.0
libtpu: 0.0.40
codegen_flags: <defaults>
</compile_context>

<pallas_src>
import functools

import numpy as np
import jax
import jax.numpy as jnp
from jax.experimental import pallas as pl
from jax.experimental.pallas import tpu as pltpu


def _round_up(n, m):
    return ((n + m - 1) // m) * m


def _pad_axis(a, axis, target):
    if a.shape[axis] == target:
        return a
    widths = [(0, 0)] * a.ndim
    widths[axis] = (0, target - a.shape[axis])
    return jnp.pad(a, widths)


def _mlp_kernel(x_ref, w1_ref, b1_ref, w2_ref, b2_ref, o_ref):
    # x_ref:  (tb, Dp)  pipelined over the (possibly ragged) batch grid
    # w1_ref: (Dp, Ip)  grid-invariant (constant index_map), matmul dtype
    # b1_ref: (1, Ip)   grid-invariant, f32
    # w2_ref: (Ip, Op)  grid-invariant, matmul dtype
    # b2_ref: (1, Op)   grid-invariant, f32
    # o_ref:  (tb, Op)  f32
    w1 = w1_ref[...]
    w2 = w2_ref[...]
    x = x_ref[...].astype(w1.dtype)            # activation cast stays in-kernel
    h = jnp.dot(x, w1, preferred_element_type=jnp.float32)
    h = jnp.maximum(h + b1_ref[...], 0.0)      # bias-add + ReLU in f32
    out = jnp.dot(h.astype(w2.dtype), w2, preferred_element_type=jnp.float32)
    o_ref[...] = (out + b2_ref[...]).astype(o_ref.dtype)


@functools.partial(jax.jit, static_argnames=("tb", "matmul_dtype"))
def probe_mlp(x, w1, b1, w2, b2, *, tb=None, matmul_dtype=jnp.bfloat16):
    """Fused Linear -> ReLU -> Linear.  x: (B, D) -> f32 logits (B, O)."""
    B, D = x.shape
    I = w1.shape[1]
    O = w2.shape[1]

    # Lane-dense / MXU-aligned feature dims (multiples of 128).  Zero padding is
    # exact through Linear/ReLU and is a no-op when already aligned.
    Dp = _round_up(D, 128)
    Ip = _round_up(I, 128)
    Op = _round_up(O, 128)

    wdt = matmul_dtype if matmul_dtype is not None else w1.dtype
    w_bytes = np.dtype(wdt).itemsize
    x_bytes = np.dtype(x.dtype).itemsize

    # ---- batch tile selection (no batch padding: ragged cdiv grid) ----------
    if tb is None:
        if B <= 256:
            tb = _round_up(B, 8)                 # single resident tile
        elif B <= 4096:
            tb = _round_up(-(-B // 2), 8)        # 2 balanced tiles (both v7x TCs)
        else:
            tb = 2048                            # large B: amortize step overhead
    tb = max(8, _round_up(min(tb, max(B, 8)), 8))

    # Cap tb so double-buffered x/out tiles + resident weights fit ~40 MiB
    # (safe against v7x's 64 MiB per-TC VMEM / 32 MiB default scoped limit).
    weight_vmem = 2 * ((Dp * Ip + Ip * Op) * w_bytes + (Ip + Op) * 4)
    per_row = 2 * (Dp * x_bytes + Op * 4)        # double-buffered x + out per row
    tb_cap = max(8, ((40 * 1024 * 1024 - weight_vmem) // per_row) // 8 * 8)
    tb = min(tb, tb_cap)

    grid = (pl.cdiv(B, tb),)

    # ---- operand prep (feature-dim pads are exact; weight cast is one-time) --
    xp = _pad_axis(x, 1, Dp)
    w1p = _pad_axis(_pad_axis(w1, 0, Dp), 1, Ip)
    b1p = _pad_axis(b1.reshape(1, -1), 1, Ip).astype(jnp.float32)
    w2p = _pad_axis(_pad_axis(w2, 0, Ip), 1, Op)
    b2p = _pad_axis(b2.reshape(1, -1), 1, Op).astype(jnp.float32)
    if matmul_dtype is not None:
        w1p = w1p.astype(matmul_dtype)           # wrapper-side cast (once per call)
        w2p = w2p.astype(matmul_dtype)

    # ---- scheduling hints ----------------------------------------------------
    flops = 2 * B * (Dp * Ip + Ip * Op)
    bytes_accessed = (B * Dp * x_bytes + B * Op * 4
                      + (Dp * Ip + Ip * Op) * w_bytes + (Ip + Op) * 4)
    vmem_need = per_row * tb + weight_vmem
    compiler_kwargs = dict(dimension_semantics=("parallel",))
    if vmem_need > 12 * 1024 * 1024:
        compiler_kwargs["vmem_limit_bytes"] = min(
            int(vmem_need * 1.25) + (2 << 20), 64 * 1024 * 1024)

    out = pl.pallas_call(
        _mlp_kernel,
        out_shape=jax.ShapeDtypeStruct((B, Op), jnp.float32),
        grid=grid,
        in_specs=[
            pl.BlockSpec((tb, Dp), lambda i: (i, 0)),   # x tile (pipelined)
            pl.BlockSpec((Dp, Ip), lambda i: (0, 0)),   # W1 (grid-invariant)
            pl.BlockSpec((1, Ip), lambda i: (0, 0)),    # b1 (grid-invariant)
            pl.BlockSpec((Ip, Op), lambda i: (0, 0)),   # W2 (grid-invariant)
            pl.BlockSpec((1, Op), lambda i: (0, 0)),    # b2 (grid-invariant)
        ],
        out_specs=pl.BlockSpec((tb, Op), lambda i: (i, 0)),
        compiler_params=pltpu.CompilerParams(**compiler_kwargs),
        cost_estimate=pl.CostEstimate(
            flops=flops, transcendentals=0, bytes_accessed=bytes_accessed),
    )(xp, w1p, b1p, w2p, b2p)
    return out if Op == O else out[:, :O]


def occupancy_board_recovery_probe(inputs, params, num_cells, num_classes,
                                   y_occupancy=None, matmul_dtype=jnp.bfloat16):
    """Mirrors OccupancyBoardRecoveryProbe.forward.

    inputs: (..., input_dim)
    returns (occupancy_logits (N, num_cells, num_classes) f32, loss-or-None)
    """
    w1, b1, w2, b2 = params
    x2d = inputs.reshape(-1, inputs.shape[-1])
    flat_logits = probe_mlp(x2d, w1, b1, w2, b2, matmul_dtype=matmul_dtype)
    occupancy_logits = flat_logits.reshape(-1, num_cells, num_classes)
    if y_occupancy is None:
        return occupancy_logits, None
    # Cross-entropy (mean over all cells), matching F.cross_entropy's default
    # 'mean' reduction.  Plain-JAX glue over the kernel's f32 logits.
    lg = occupancy_logits.reshape(-1, num_classes)
    yy = y_occupancy.reshape(-1)
    lse = jax.nn.logsumexp(lg, axis=-1)
    picked = jnp.take_along_axis(lg, yy[:, None], axis=-1)[:, 0]
    loss = jnp.mean(lse - picked)
    return occupancy_logits, loss


def init_params(key, input_dim, intermediate_dim, num_cells, num_classes,
                dtype=jnp.float32):
    """Matches _init_weights: weights ~ N(0, 0.02), bias = 0.  Stored (in, out)."""
    k1, k2 = jax.random.split(key)
    out_dim = num_cells * num_classes
    w1 = (0.02 * jax.random.normal(k1, (input_dim, intermediate_dim))).astype(dtype)
    b1 = jnp.zeros((1, intermediate_dim), dtype)
    w2 = (0.02 * jax.random.normal(k2, (intermediate_dim, out_dim))).astype(dtype)
    b2 = jnp.zeros((1, out_dim), dtype)
    return w1, b1, w2, b2


if __name__ == "__main__":
    # Small shapes consistent with the module's forward.
    batch = 8
    input_dim = 256
    intermediate_dim = 128
    num_cells = 8
    num_classes = 16  # out_dim = 128

    key = jax.random.PRNGKey(0)
    kx, kp, ky, kx2, kq = jax.random.split(key, 5)

    x = jax.random.normal(kx, (batch, input_dim), jnp.float32)
    params = init_params(kp, input_dim, intermediate_dim, num_cells, num_classes)
    w1, b1, w2, b2 = params
    y = jax.random.randint(ky, (batch, num_cells), 0, num_classes)

    ref = (jnp.maximum(x @ w1 + b1, 0.0) @ w2 + b2).reshape(
        -1, num_cells, num_classes)

    # --- exact f32 MXU-operand path (tight tolerance) ------------------------
    logits_f32 = probe_mlp(x, w1, b1, w2, b2, matmul_dtype=None)
    logits_f32 = jax.block_until_ready(logits_f32)
    assert logits_f32.shape == (batch, num_cells * num_classes)
    assert jnp.allclose(logits_f32.reshape(-1, num_cells, num_classes), ref,
                        atol=1e-4, rtol=1e-4)

    # --- default path: bf16 MXU operands, f32 accumulation / f32 logits ------
    logits, _ = occupancy_board_recovery_probe(x, params, num_cells, num_classes)
    logits = jax.block_until_ready(logits)
    assert logits.shape == (batch, num_cells, num_classes)
    assert logits.dtype == jnp.float32
    assert jnp.allclose(logits, ref, atol=5e-2, rtol=5e-2)

    # --- ragged larger batch: no batch padding, 2 balanced grid tiles --------
    big_b = 600
    xb = jax.random.normal(kx2, (big_b, input_dim), jnp.float32)
    logits_b, _ = occupancy_board_recovery_probe(xb, params, num_cells, num_classes)
    logits_b = jax.block_until_ready(logits_b)
    ref_b = (jnp.maximum(xb @ w1 + b1, 0.0) @ w2 + b2).reshape(
        -1, num_cells, num_classes)
    assert logits_b.shape == (big_b, num_cells, num_classes)
    assert jnp.allclose(logits_b, ref_b, atol=5e-2, rtol=5e-2)

    # --- unaligned feature dims (exercises 128-padding + output slice) -------
    d2, i2, nc2, ncls2 = 200, 96, 7, 11          # O = 77, all dims off-grid
    p2 = init_params(kq, d2, i2, nc2, ncls2)
    w1b, b1b, w2b, b2b = p2
    x2 = jax.random.normal(kx2, (batch, d2), jnp.float32)
    out2 = probe_mlp(x2, w1b, b1b, w2b, b2b, matmul_dtype=None)
    out2 = jax.block_until_ready(out2)
    ref2 = jnp.maximum(x2 @ w1b + b1b, 0.0) @ w2b + b2b
    assert out2.shape == (batch, nc2 * ncls2)
    assert jnp.allclose(out2, ref2, atol=1e-4, rtol=1e-4)

    # --- labeled path (cross-entropy glue) ------------------------------------
    logits2, loss = occupancy_board_recovery_probe(
        x, params, num_cells, num_classes, y_occupancy=y)
    jax.block_until_ready((logits2, loss))
    assert bool(jnp.isfinite(loss))

    print("KERNEL_OK")
</pallas_src>

<mosaic_0001>
module attributes {stable_mosaic.version = 11 : i64} {
  func.func @_mlp_kernel(%arg0: i32, %arg1: memref<8x256xf32, #tpu.memory_space<vmem>>, %arg2: memref<256x128xf32, #tpu.memory_space<vmem>>, %arg3: memref<1x128xf32, #tpu.memory_space<vmem>>, %arg4: memref<128x128xf32, #tpu.memory_space<vmem>>, %arg5: memref<1x128xf32, #tpu.memory_space<vmem>>, %arg6: memref<8x128xf32, #tpu.memory_space<vmem>>) attributes {dimension_semantics = [#tpu.dimension_semantics<parallel>], iteration_bounds = array<i64: 1>, scalar_prefetch = 0 : i64, scratch_operands = 0 : i64, tpu.core_type = #tpu.core_type<tc>, window_params = [{transform_indices = @transform_0, window_bounds = array<i64: 8, 256>}, {pipeline_mode = #tpu.pipeline_mode<synchronous>, transform_indices = @transform_1, window_bounds = array<i64: 256, 128>}, {pipeline_mode = #tpu.pipeline_mode<synchronous>, transform_indices = @transform_2, window_bounds = array<i64: 1, 128>}, {pipeline_mode = #tpu.pipeline_mode<synchronous>, transform_indices = @transform_3, window_bounds = array<i64: 128, 128>}, {pipeline_mode = #tpu.pipeline_mode<synchronous>, transform_indices = @transform_4, window_bounds = array<i64: 1, 128>}, {transform_indices = @transform_5, window_bounds = array<i64: 8, 128>}]} {
    %c0 = arith.constant 0 : index
    %c0_0 = arith.constant 0 : index
    %0 = vector.load %arg2[%c0, %c0_0] : memref<256x128xf32, #tpu.memory_space<vmem>>, vector<256x128xf32>
    %c0_1 = arith.constant 0 : index
    %c0_2 = arith.constant 0 : index
    %1 = vector.load %arg4[%c0_1, %c0_2] : memref<128x128xf32, #tpu.memory_space<vmem>>, vector<128x128xf32>
    %c0_3 = arith.constant 0 : index
    %c0_4 = arith.constant 0 : index
    %2 = vector.load %arg1[%c0_3, %c0_4] : memref<8x256xf32, #tpu.memory_space<vmem>>, vector<8x256xf32>
    %cst = arith.constant dense<0.000000e+00> : vector<8x128xf32>
    %3 = tpu.matmul %2, %0, %cst {dimension_numbers = #tpu.dot_dimension_numbers<[1], [0], [0], [1], [0, 0, 1, 1], [], []>} : vector<8x256xf32>, vector<256x128xf32>, vector<8x128xf32> -> vector<8x128xf32>
    %c0_5 = arith.constant 0 : index
    %c0_6 = arith.constant 0 : index
    %4 = vector.load %arg3[%c0_5, %c0_6] : memref<1x128xf32, #tpu.memory_space<vmem>>, vector<1x128xf32>
    %5 = vector.broadcast %4 : vector<1x128xf32> to vector<8x128xf32>
    %6 = arith.addf %3, %5 : vector<8x128xf32>
    %cst_7 = arith.constant 0.000000e+00 : f32
    %7 = vector.broadcast %cst_7 : f32 to vector<8x128xf32>
    %8 = arith.maximumf %6, %7 : vector<8x128xf32>
    %cst_8 = arith.constant dense<0.000000e+00> : vector<8x128xf32>
    %9 = tpu.matmul %8, %1, %cst_8 {dimension_numbers = #tpu.dot_dimension_numbers<[1], [0], [0], [1], [0, 0, 1, 1], [], []>} : vector<8x128xf32>, vector<128x128xf32>, vector<8x128xf32> -> vector<8x128xf32>
    %c0_9 = arith.constant 0 : index
    %c0_10 = arith.constant 0 : index
    %10 = vector.load %arg5[%c0_9, %c0_10] : memref<1x128xf32, #tpu.memory_space<vmem>>, vector<1x128xf32>
    %11 = vector.broadcast %10 : vector<1x128xf32> to vector<8x128xf32>
    %12 = arith.addf %9, %11 : vector<8x128xf32>
    %c0_11 = arith.constant 0 : index
    %c0_12 = arith.constant 0 : index
    %13 = vector.load %arg6[%c0_11, %c0_12] : memref<8x128xf32, #tpu.memory_space<vmem>>, vector<8x128xf32>
    tpu.vector_store %arg6[%c0_11, %c0_12], %12 {strides = array<i32>} : memref<8x128xf32, #tpu.memory_space<vmem>>, vector<8x128xf32>,
    return
  }
  func.func @transform_0(%arg0: i32) -> (i32, i32) {
    %c0_i32 = arith.constant 0 : i32
    %c0_i32_0 = arith.constant 0 : i32
    return %arg0, %c0_i32 : i32, i32
  }
  func.func @transform_1(%arg0: i32) -> (i32, i32) {
    %c0_i32 = arith.constant 0 : i32
    %c0_i32_0 = arith.constant 0 : i32
    %c0_i32_1 = arith.constant 0 : i32
    return %c0_i32, %c0_i32_0 : i32, i32
  }
  func.func @transform_2(%arg0: i32) -> (i32, i32) {
    %c0_i32 = arith.constant 0 : i32
    %c0_i32_0 = arith.constant 0 : i32
    %c0_i32_1 = arith.constant 0 : i32
    return %c0_i32, %c0_i32_0 : i32, i32
  }
  func.func @transform_3(%arg0: i32) -> (i32, i32) {
    %c0_i32 = arith.constant 0 : i32
    %c0_i32_0 = arith.constant 0 : i32
    %c0_i32_1 = arith.constant 0 : i32
    return %c0_i32, %c0_i32_0 : i32, i32
  }
  func.func @transform_4(%arg0: i32) -> (i32, i32) {
    %c0_i32 = arith.constant 0 : i32
    %c0_i32_0 = arith.constant 0 : i32
    %c0_i32_1 = arith.constant 0 : i32
    return %c0_i32, %c0_i32_0 : i32, i32
  }
  func.func @transform_5(%arg0: i32) -> (i32, i32) {
    %c0_i32 = arith.constant 0 : i32
    %c0_i32_0 = arith.constant 0 : i32
    return %arg0, %c0_i32 : i32, i32
  }
}

</mosaic_0001>

<bundles_post_ra>
// kernel: probe_mlp.1
= control target key start
LH: loop header
LB: loop body
LE: loop exit
PB: predicated region body
PF: predicated region fallthrough
CT: control target
= control target key end

     0   :  { %10 = vsyncpa [#allocation3], 0  ;;  %s637_s0 = inlined_call_operand.hbm [shape: f32[8,256], index: 0, kind: input, shape index: {}]   ;;  %s638_s1 = inlined_call_operand.hbm [shape: f32[256,128], index: 1, kind: input, shape index: {}]   ;;  %s639_s2 = inlined_call_operand.vmem [shape: f32[1,128], index: 2, kind: input, shape index: {}]   ;;  %s640_s3 = inlined_call_operand.hbm [shape: f32[128,128], index: 3, kind: input, shape index: {}]   ;;  %s641_s4 = inlined_call_operand.vmem [shape: f32[1,128], index: 4, kind: input, shape index: {}]   ;;  %s642_s5 = inlined_call_operand.hbm [shape: f32[8,128], index: 5, kind: output, shape index: {}]  }
   0x1   :  { %11 = vsyncpa [#allocation6], 0 }
   0x2   :  { %12 = vsyncpa [#allocation4], 0  ;;  %s530_s18 = smov [#allocation5]   ;;  %s436_s22 = scalar_lea.hbm %s638_s1, 4096 }
   0x3   :  { %s28_s19 = sshll.u32 %s530_s18, 4  ;;  %p437_p0 = scmp.ne.s32.totalorder %s638_s1, %s436_s22  ;;  %s29_s19 = int_to_ptr.vmem [resolvable:$true] %s28_s19 }
   0x4   :  { %p440_p1 = scmp.lt.u32.totalorder %s436_s22, %s638_s1 }
   0x6   :  { %p442_p2 = pnand %p440_p1, %p437_p0 }
   0x8   :  { %445 = shalt.err (!%p442_p2)
}
   0x9   :  { %s446_s27 = scalar_lea.vmem %s29_s19, 4096  ;;  %p451_p4 = scmp.lt.s32.totalorder %s29_s19, %s29_s19 }
   0xa   :  { %p447_p3 = scmp.ne.s32.totalorder %s29_s19, %s446_s27  ;;  %p452_p5 = scmp.lt.s32.totalorder %s446_s27, %s446_s27 }
   0xc   :  { %p453_p6 = por %p452_p5, %p451_p4 }
   0xe   :  { %p454_p7 = pnand %p453_p6, %p447_p3 }
  0x10   :  { %457 = shalt.err (!%p454_p7)
}
  0x11   :  { %s531_s28 = smov 128   ;;  %s532_s29 = smov 8  }
  0x12   :  { %34 = dma.hbm_to_vmem [thread:$0]  %s638_s1, 4096, %s29_s19, [#allocation6], %s531_s28, %s531_s28, %s532_s29  }
  0x13   :  { %s533_s7 = smov [#allocation2]   ;;  %s534_s9 = smov [#allocation7]  }
  0x14   :  { %s19_s8 = sshll.u32 %s533_s7, 4  ;;  %s42_s10 = sshll.u32 %s534_s9, 4  ;;  %s20_s8 = int_to_ptr.vmem [resolvable:$true] %s19_s8  ;;  %s43_s10 = int_to_ptr.vmem [resolvable:$true] %s42_s10 }
  0x15   :  { %s458_s13 = scalar_lea.hbm %s637_s0, 256 }
  0x16   :  { %p459_p8 = scmp.ne.s32.totalorder %s637_s0, %s458_s13  ;;  %p462_p9 = scmp.lt.u32.totalorder %s458_s13, %s637_s0 }
  0x18   :  { %p464_p10 = pnand %p462_p9, %p459_p8 }
  0x1a   :  { %467 = shalt.err (!%p464_p10)
}
  0x1b   :  { %s468_s1 = scalar_lea.vmem %s20_s8, 256  ;;  %p473_p12 = scmp.lt.s32.totalorder %s20_s8, %s20_s8 }
  0x1c   :  { %p469_p11 = scmp.ne.s32.totalorder %s20_s8, %s468_s1  ;;  %p474_p13 = scmp.lt.s32.totalorder %s468_s1, %s468_s1 }
  0x1e   :  { %p475_p0 = por %p474_p13, %p473_p12 }
  0x20   :  { %p476_p1 = pnand %p475_p0, %p469_p11 }
  0x22   :  { %479 = shalt.err (!%p476_p1)
}
  0x23   :  { %22 = dma.hbm_to_vmem [thread:$0]  %s637_s0, 256, %s20_s8, [#allocation3]  }
  0x24   :  { %s480_s22 = scalar_lea.hbm %s640_s3, 2048 }
  0x25   :  { %p481_p2 = scmp.ne.s32.totalorder %s640_s3, %s480_s22  ;;  %p484_p3 = scmp.lt.u32.totalorder %s480_s22, %s640_s3 }
  0x27   :  { %p486_p4 = pnand %p484_p3, %p481_p2 }
  0x29   :  { %489 = shalt.err (!%p486_p4)
}
  0x2a   :  { %s490_s27 = scalar_lea.vmem %s43_s10, 2048  ;;  %p495_p6 = scmp.lt.s32.totalorder %s43_s10, %s43_s10 }
  0x2b   :  { %p491_p5 = scmp.ne.s32.totalorder %s43_s10, %s490_s27  ;;  %p496_p7 = scmp.lt.s32.totalorder %s490_s27, %s490_s27 }
  0x2d   :  { %p497_p8 = por %p496_p7, %p495_p6 }
  0x2f   :  { %p498_p9 = pnand %p497_p8, %p491_p5 }
  0x31   :  { %501 = shalt.err (!%p498_p9)
}
  0x32   :  { %48 = dma.hbm_to_vmem [thread:$0]  %s640_s3, 2048, %s43_s10, [#allocation6], %s531_s28, %s531_s28, %s532_s29  }
  0x33   :  { %524 = dma.done.wait [#allocation3], 256  }
  0x34   :  { %525 = vsyncadd [#allocation3], 4294967040 }
  0x35   :  { %526 = dma.done.wait [#allocation6], 6144  }
  0x36   :  { %527 = vsyncadd [#allocation6], 4294961152  ;;  %v535_v0 = vmov 0.0|0.0   ;;  %v76_v1 = vld [vmem:[#allocation5 + $0x80] sm:$0xff]  ;;  %v77_v2 = vld [vmem:[#allocation5 + $0x88] sm:$0xff]  ;;  %vm536_vm0 = vmmov 0  }
  0x37   :  { %403 = vmatprep.subr.bf16.mxu1 %v535_v0  ;;  %v60_v3 = vld [vmem:[#allocation5] sm:$0xff]  ;;  %v371_v4 = vpack.c.bf16 %v77_v2, %v76_v1  ;;  %v61_v5 = vld [vmem:[#allocation5 + $0x8] sm:$0xff]  ;;  %v78_v6 = vld [vmem:[#allocation5 + $0x90] sm:$0xff]  ;;  %s538_s7 = smov [#allocation8]  }
  0x38   :  { %v79_v7 = vld [vmem:[#allocation5 + $0x98] sm:$0xff]  ;;  %v373_v8 = vpack.c.bf16 %v61_v5, %v60_v3  ;;  %v62_v10 = vld [vmem:[#allocation5 + $0x10] sm:$0xff]  ;;  %v80_v12 = vld [vmem:[#allocation5 + $0xa0] sm:$0xff]  ;;  %s272_s8 = sshll.u32 %s538_s7, 4  ;;  %s273_s8 = int_to_ptr.vmem [resolvable:$true] %s272_s8 }
  0x39   :  { %v375_v9 = vpack.c.bf16 %v79_v7, %v78_v6  ;;  %v63_v11 = vld [vmem:[#allocation5 + $0x18] sm:$0xff]  ;;  %372 = vmatprep.subr.bf16.mxu0 %v371_v4  ;;  %v81_v13 = vld [vmem:[#allocation5 + $0xa8] sm:$0xff]  ;;  %v64_v16 = vld [vmem:[#allocation5 + $0x20] sm:$0xff]  ;;  %s502_s9 = scalar_lea.vmem %s273_s8, 128  ;;  %p507_p11 = scmp.lt.s32.totalorder %s273_s8, %s273_s8 }
  0x3a   :  { %374 = vmatpush3.bf16.msra.mxu0 %v373_v8  ;;  %v377_v14 = vpack.c.bf16 %v63_v11, %v62_v10  ;;  %v379_v15 = vpack.c.bf16 %v81_v13, %v80_v12  ;;  %v65_v17 = vld [vmem:[#allocation5 + $0x28] sm:$0xff]  ;;  %v82_v18 = vld [vmem:[#allocation5 + $0xb0] sm:$0xff]  ;;  %v83_v19 = vld [vmem:[#allocation5 + $0xb8] sm:$0xff]  ;;  %v537_v12 = vmov 0.0   ;;  %p503_p10 = scmp.ne.s32.totalorder %s273_s8, %s502_s9  ;;  %p508_p12 = scmp.lt.s32.totalorder %s502_s9, %s502_s9 }
  0x3b   :  { %376 = vmatprep.subr.bf16.mxu0 %v375_v9  ;;  %v381_v20 = vpack.c.bf16 %v65_v17, %v64_v16  ;;  %v383_v21 = vpack.c.bf16 %v83_v19, %v82_v18  ;;  %v66_v22 = vld [vmem:[#allocation5 + $0x30] sm:$0xff]  ;;  %v67_v23 = vld [vmem:[#allocation5 + $0x38] sm:$0xff]  ;;  %v84_v24 = vld [vmem:[#allocation5 + $0xc0] sm:$0xff]  ;;  %368 = vmatprep.mubr.msk.f32.mxu1 %vm536_vm0, %v537_v12 }
  0x3c   :  { %v85_v25 = vld [vmem:[#allocation5 + $0xc8] sm:$0xff]  ;;  %v109_v26 = vld [vmem:[#allocation2 + $0x8] sm:$0xff]  ;;  %v92_v27 = vld [vmem:[#allocation7] sm:$0xff]  ;;  %v385_v29 = vpack.c.bf16 %v67_v23, %v66_v22  ;;  %p509_p13 = por %p508_p12, %p507_p11 }
  0x3d   :  { %181 = vmatprep.mubr.f32.mxu0 %v109_v26  ;;  %v93_v28 = vld [vmem:[#allocation7 + $0x8] sm:$0xff]  ;;  %v94_v31 = vld [vmem:[#allocation7 + $0x10] sm:$0xff]  ;;  %v95_v32 = vld [vmem:[#allocation7 + $0x18] sm:$0xff]  ;;  %v387_v33 = vpack.c.bf16 %v85_v25, %v84_v24 }
  0x3e   :  { %378 = vmatpush3.bf16.msra.mxu0 %v377_v14  ;;  %v404_v30 = vpack.c.bf16 %v93_v28, %v92_v27  ;;  %v68_v34 = vld [vmem:[#allocation5 + $0x40] sm:$0xff]  ;;  %v69_v35 = vld [vmem:[#allocation5 + $0x48] sm:$0xff]  ;;  %v86_v36 = vld [vmem:[#allocation5 + $0xd0] sm:$0xff]  ;;  %v407_v38 = vpack.c.bf16 %v95_v32, %v94_v31  ;;  %p510_p0 = pnand %p509_p13, %p503_p10 }
  0x3f   :  { %380 = vmatprep.subr.bf16.mxu0 %v379_v15  ;;  %v87_v37 = vld [vmem:[#allocation5 + $0xd8] sm:$0xff]  ;;  %v96_v39 = vld [vmem:[#allocation7 + $0x20] sm:$0xff]  ;;  %v97_v40 = vld [vmem:[#allocation7 + $0x28] sm:$0xff]  ;;  %v389_v41 = vpack.c.bf16 %v69_v35, %v68_v34 }
  0x40   :  { %405 = vmatpush3.bf16.msra.mxu1 %v404_v30  ;;  %v391_v42 = vpack.c.bf16 %v87_v37, %v86_v36  ;;  %v70_v43 = vld [vmem:[#allocation5 + $0x50] sm:$0xff]  ;;  %v71_v44 = vld [vmem:[#allocation5 + $0x58] sm:$0xff]  ;;  %v88_v45 = vld [vmem:[#allocation5 + $0xe0] sm:$0xff]  ;;  %v410_v47 = vpack.c.bf16 %v97_v40, %v96_v39 }
  0x41   :  { %406 = vmatprep.subr.bf16.mxu1 %v535_v0  ;;  %v89_v46 = vld [vmem:[#allocation5 + $0xe8] sm:$0xff]  ;;  %v98_v48 = vld [vmem:[#allocation7 + $0x30] sm:$0xff]  ;;  %v99_v49 = vld [vmem:[#allocation7 + $0x38] sm:$0xff]  ;;  %v393_v50 = vpack.c.bf16 %v71_v44, %v70_v43 }
  0x42   :  { %382 = vmatpush3.bf16.msra.mxu0 %v381_v20  ;;  %v395_v51 = vpack.c.bf16 %v89_v46, %v88_v45  ;;  %v72_v52 = vld [vmem:[#allocation5 + $0x60] sm:$0xff]  ;;  %v73_v53 = vld [vmem:[#allocation5 + $0x68] sm:$0xff]  ;;  %v90_v54 = vld [vmem:[#allocation5 + $0xf0] sm:$0xff]  ;;  %v413_v56 = vpack.c.bf16 %v99_v49, %v98_v48 }
  0x43   :  { %384 = vmatprep.subr.bf16.mxu0 %v383_v21  ;;  %v91_v55 = vld [vmem:[#allocation5 + $0xf8] sm:$0xff]  ;;  %v100_v57 = vld [vmem:[#allocation7 + $0x40] sm:$0xff]  ;;  %v101_v58 = vld [vmem:[#allocation7 + $0x48] sm:$0xff]  ;;  %v397_v59 = vpack.c.bf16 %v73_v53, %v72_v52 }
  0x44   :  { %408 = vmatpush3.bf16.msra.mxu1 %v407_v38  ;;  %v399_v60 = vpack.c.bf16 %v91_v55, %v90_v54  ;;  %v74_v61 = vld [vmem:[#allocation5 + $0x70] sm:$0xff]  ;;  %v75_v62 = vld [vmem:[#allocation5 + $0x78] sm:$0xff]  ;;  %v416_v63 = vpack.c.bf16 %v101_v58, %v100_v57  ;;  %v104_v6 = vld [vmem:[#allocation7 + $0x60] sm:$0xff] }
  0x45   :  { %409 = vmatprep.subr.bf16.mxu1 %v535_v0  ;;  %v102_v1 = vld [vmem:[#allocation7 + $0x50] sm:$0xff]  ;;  %v103_v2 = vld [vmem:[#allocation7 + $0x58] sm:$0xff]  ;;  %v401_v3 = vpack.c.bf16 %v75_v62, %v74_v61  ;;  %v105_v7 = vld [vmem:[#allocation7 + $0x68] sm:$0xff] }
  0x46   :  { %386 = vmatpush3.bf16.msra.mxu0 %v385_v29  ;;  %v419_v4 = vpack.c.bf16 %v103_v2, %v102_v1  ;;  %v108_v5 = vld [vmem:[#allocation2] sm:$0xff]  ;;  %v422_v8 = vpack.c.bf16 %v105_v7, %v104_v6  ;;  %v107_v10 = vld [vmem:[#allocation7 + $0x78] sm:$0xff] }
  0x47   :  { %388 = vmatprep.subr.bf16.mxu0 %v387_v33  ;;  %v106_v9 = vld [vmem:[#allocation7 + $0x70] sm:$0xff] }
  0x48   :  { %411 = vmatpush3.bf16.msra.mxu1 %v410_v47  ;;  %v425_v11 = vpack.c.bf16 %v107_v10, %v106_v9  ;;  %v282_v14 = vld [vmem:[%s639_s2] ss:$0 sm:$0xff] }
  0x49   :  { %412 = vmatprep.subr.bf16.mxu1 %v535_v0 }
  0x4a   :  { %390 = vmatpush3.bf16.msra.mxu0 %v389_v41 }
  0x4b   :  { %392 = vmatprep.subr.bf16.mxu0 %v391_v42 }
  0x4c   :  { %414 = vmatpush3.bf16.msra.mxu1 %v413_v56 }
  0x4d   :  { %415 = vmatprep.subr.bf16.mxu1 %v535_v0 }
  0x4e   :  { %394 = vmatpush3.bf16.msra.mxu0 %v393_v50 }
  0x4f   :  { %396 = vmatprep.subr.bf16.mxu0 %v395_v51 }
  0x50   :  { %417 = vmatpush3.bf16.msra.mxu1 %v416_v63 }
  0x51   :  { %418 = vmatprep.subr.bf16.mxu1 %v535_v0 }
  0x52   :  { %398 = vmatpush3.bf16.msra.mxu0 %v397_v59 }
  0x53   :  { %400 = vmatprep.subr.bf16.mxu0 %v399_v60 }
  0x54   :  { %420 = vmatpush3.bf16.msra.mxu1 %v419_v4 }
  0x55   :  { %421 = vmatprep.subr.bf16.mxu1 %v535_v0 }
  0x56   :  { %402 = vmatpush3.bf16.msra.mxu0 %v401_v3 }
  0x58   :  { %423 = vmatpush3.bf16.msra.mxu1 %v422_v8 }
  0x59   :  { %182 = vmatmul.mubr.f32.vlgmr.msra.gmra.mrb[0].mxu0 %v108_v5  ;;  %424 = vmatprep.subr.bf16.mxu1 %v535_v0  ;;  %v283_v0 = vld [vmem:[%s641_s4] ss:$0 sm:$0xff] }
  0x5c   :  { %426 = vmatpush3.bf16.msra.mxu1 %v425_v11 }
 0x12c   :  { %v316_v13 = vpop.f32.mrb[0].mxu0 }
 0x12d   :  { %v317_v15 = vpop.f32.mrb[1].mxu0 }
 0x12e   :  { %v318_v16 = vadd.f32 %v317_v15, %v316_v13 }
 0x130   :  { %v184_v17 = vadd.f32 %v318_v16, %v282_v14 }
 0x132   :  { %v187_v18 = vmax.f32 %v184_v17, 0.0 }
 0x134   :  { %369 = vmatmul.mubr.f32.vlgmr.msra.gmra.mrb[0].mxu1 %v187_v18 }
 0x207   :  { %v261_v19 = vpop.f32.mrb[0].mxu1 }
 0x208   :  { %v262_v20 = vadd.f32 %v283_v0, %v261_v19  ;;  %v370_v21 = vpop.f32.mrb[1].mxu1 }
 0x20a   :  { %265 = vst [vmem:[#allocation8] sm:$0xff] %v262_v20 }
 0x20b   :  { %513 = shalt.err (!%p510_p0)
}
 0x20c   :  { %s514_s11 = scalar_lea.hbm %s642_s5, 128 }
 0x20d   :  { %p515_p1 = scmp.ne.s32.totalorder %s642_s5, %s514_s11  ;;  %p518_p2 = scmp.lt.u32.totalorder %s514_s11, %s642_s5 }
 0x20f   :  { %p520_p3 = pnand %p518_p2, %p515_p1 }
 0x211   :  { %523 = shalt.err (!%p520_p3)
}
 0x212   :  { %275 = dma.vmem_to_hbm [thread:$0]  %s273_s8, 128, %s642_s5, [#allocation4]  }
 0x213   :  { %528 = dma.done.wait [#allocation4], 128  }
 0x214   :  { %529 = vsyncadd [#allocation4], 4294967168 }
 0x215   :  { %279 = vsyncpa [#allocation3], 1 }
 0x216   :  { %280 = vsyncpa [#allocation6], 1 }
 0x217   :  { %281 = vsyncpa [#allocation4], 1 }

</bundles_post_ra>
